<compile_context>
chip_gen: v7x
topology: tpu7x:2x2x1
jax: 0.10.0
libtpu: 0.0.40
codegen_flags: <defaults>
</compile_context>

<pallas_src>
import functools

import jax
import jax.numpy as jnp
from jax import lax
from jax.experimental import pallas as pl
from jax.experimental.pallas import tpu as pltpu

LANES = 128
SUBLANES = 8
MAX_TILE_ROWS = 4096        # 4096*128*4B = 2 MiB per f32 block (~86% HBM roofline)
NUM_SLICES = 2              # split tiles across 2 TCs on v7x; harmless on 1-TC chips
SMALL_FUSE_ELEMS = 1 << 16  # list path: only fuse tensors below ~256 KiB (f32)


def _l12_kernel(x_ref, o_ref, acc_ref, *, a, c1, c2, c3, tile_rows, acc_rows,
                num_tiles, tiles_per_slice, valid_rows_last, needs_tail_mask,
                has_phantom):
    c = pl.program_id(0)          # slice (parallel) index
    i = pl.program_id(1)          # tile-within-slice (reduction) index
    t = c * tiles_per_slice + i   # global tile index

    @pl.when(i == 0)
    def _init():
        acc_ref[...] = jnp.zeros_like(acc_ref)

    x = x_ref[...].astype(jnp.float32)
    abs_x = jnp.abs(x)
    x2 = x * x
    # Horner form: c1 = -1/(8a^3), c2 = 3/(4a), c3 = 3a/8
    poly = x2 * (x2 * c1 + c2) + c3
    val = jnp.sqrt(jnp.where(abs_x < a, poly, abs_x))

    def _accumulate(v):
        # In-tile vertical reduction to a small (acc_rows, LANES) partial:
        # pure VALU adds, no per-vreg accumulator load/store traffic.
        full = (tile_rows // acc_rows) * acc_rows
        if full:
            body = v if full == tile_rows else v[:full]
            acc_ref[...] += body.reshape(full // acc_rows, acc_rows, LANES).sum(axis=0)
        rem = tile_rows - full
        if rem:
            # Only reachable for tiny single-tile inputs (tile_rows % 8 != 0).
            acc_ref[0:rem, :] += v[full:, :]

    if not needs_tail_mask and not has_phantom:
        _accumulate(val)                      # hot path: no branches, no masks
    else:
        @pl.when(t < num_tiles - 1)
        def _body():
            _accumulate(val)

        @pl.when(t == num_tiles - 1)
        def _tail():
            if needs_tail_mask:
                # Rows past valid_rows_last come from an OOB block region
                # (undefined data) -> select with where, never multiply.
                row = lax.broadcasted_iota(jnp.int32, (tile_rows, LANES), 0)
                _accumulate(jnp.where(row < valid_rows_last, val, 0.0))
            else:
                _accumulate(val)
        # t > num_tiles - 1 (phantom duplicate block): contribute nothing.

    @pl.when(i == tiles_per_slice - 1)
    def _fin():
        acc = acc_ref[...]
        if acc_rows == SUBLANES:
            slab = acc
        else:
            slab = acc.reshape(acc_rows // SUBLANES, SUBLANES, LANES).sum(axis=0)
        o_ref[...] = slab


def _l12_smooth_single(x, a=0.05, max_tile_rows=MAX_TILE_ROWS,
                       num_slices=NUM_SLICES):
    x = jnp.asarray(x)
    n = int(x.size)
    if n == 0:
        return jnp.float32(0.0)

    a_f = float(a)
    flat = jnp.ravel(x)  # free metadata reshape for contiguous inputs

    # Align to whole 128-lane rows. For n % 128 == 0 (the common case for NN
    # tensors) this is copy-free; otherwise we pad < 128 elements (XLA still
    # materializes the padded copy) and subtract the exact padding
    # contribution n_pad * sqrt(3a/8) below.
    n_pad = (-n) % LANES
    if n_pad:
        flat = jnp.pad(flat, (0, n_pad))
    rows = (n + n_pad) // LANES
    x2d = flat.reshape(rows, LANES)

    tile_rows = min(int(max_tile_rows), rows)
    if tile_rows < rows:
        # Multi-tile: keep the block sublane-aligned.
        tile_rows = max(SUBLANES, (tile_rows // SUBLANES) * SUBLANES)
    num_tiles = -(-rows // tile_rows)
    valid_rows_last = rows - (num_tiles - 1) * tile_rows
    needs_tail_mask = valid_rows_last != tile_rows

    # Slice the tiles across TensorCores (v7x megacore). On 1-TC chips the
    # "parallel" axis just runs serially with negligible overhead.
    n_slices = max(1, min(int(num_slices), num_tiles))
    if num_tiles < 4:
        n_slices = 1
    tiles_per_slice = -(-num_tiles // n_slices)
    has_phantom = n_slices * tiles_per_slice > num_tiles

    # Small accumulator height; taller (32) when possible for better f32
    # accumulation behaviour on very large inputs.
    acc_rows = 32 if tile_rows % 32 == 0 else SUBLANES

    kernel = functools.partial(
        _l12_kernel,
        a=a_f,
        c1=float(-1.0 / (8.0 * a_f ** 3)),
        c2=float(3.0 / (4.0 * a_f)),
        c3=float(3.0 * a_f / 8.0),
        tile_rows=tile_rows,
        acc_rows=acc_rows,
        num_tiles=num_tiles,
        tiles_per_slice=tiles_per_slice,
        valid_rows_last=valid_rows_last,
        needs_tail_mask=needs_tail_mask,
        has_phantom=has_phantom,
    )

    def in_map(c, i):
        t = c * tiles_per_slice + i
        if has_phantom:
            t = jnp.minimum(t, num_tiles - 1)  # phantom tile: re-read last block
        return (t, 0)

    # VMEM allowance: 2x double-buffered input block + generous headroom for
    # full-tile f32 temporaries; clamped to [16, 32] MiB (safe on v5e/v6e/v7x).
    block_bytes = tile_rows * LANES * x2d.dtype.itemsize
    f32_block = tile_rows * LANES * 4
    vmem_limit = int(min(32 * 1024 * 1024,
                         max(16 * 1024 * 1024, 2 * block_bytes + 12 * f32_block)))

    out = pl.pallas_call(
        kernel,
        out_shape=jax.ShapeDtypeStruct((n_slices * SUBLANES, LANES), jnp.float32),
        grid_spec=pltpu.PrefetchScalarGridSpec(
            num_scalar_prefetch=0,
            grid=(n_slices, tiles_per_slice),
            in_specs=[pl.BlockSpec((tile_rows, LANES), in_map)],
            out_specs=pl.BlockSpec((SUBLANES, LANES), lambda c, i: (c, 0)),
            scratch_shapes=[pltpu.VMEM((acc_rows, LANES), jnp.float32)],
        ),
        compiler_params=pltpu.CompilerParams(
            dimension_semantics=("parallel", "arbitrary"),
            vmem_limit_bytes=vmem_limit,
        ),
    )(x2d)

    result = jnp.sum(out)  # tiny fused reduction over (n_slices*8, 128) partials
    if n_pad:
        # Each padded zero contributes sqrt(3a/8); remove it exactly (f32).
        result = result - jnp.float32(n_pad) * jnp.sqrt(jnp.float32(3.0 * a_f / 8.0))
    return result


def l12_smooth(input_tensor, a=0.05):
    """Smoothed L1/2 norm (Pallas). Handles lists like the torch version.

    NOTE: like the PyTorch recursion, the list branch always uses the default
    a = 0.05, regardless of the `a` passed in.
    """
    if isinstance(input_tensor, (list, tuple)):
        tensors = [jnp.asarray(t) for t in input_tensor]
        tensors = [t for t in tensors if t.size > 0]
        if not tensors:
            return jnp.float32(0.0)
        total = jnp.float32(0.0)
        small_groups = {}
        for t in tensors:
            if t.size >= SMALL_FUSE_ELEMS:
                # Large tensors: one pallas_call each (no concatenate HBM copy).
                total = total + _l12_smooth_single(t, 0.05)
            else:
                small_groups.setdefault(jnp.dtype(t.dtype), []).append(jnp.ravel(t))
        for flats in small_groups.values():
            cat = flats[0] if len(flats) == 1 else jnp.concatenate(flats)
            total = total + _l12_smooth_single(cat, 0.05)
        return total
    return _l12_smooth_single(input_tensor, a)


class L12Smooth:
    """JAX/Pallas equivalent of the PyTorch L12Smooth module (no parameters)."""

    def __call__(self, input_tensor, a=0.05):
        return l12_smooth(input_tensor, a)

    # Mirror nn.Module's forward name.
    forward = __call__


def _reference(x, a=0.05):
    x = jnp.asarray(x, jnp.float32)
    abs_x = jnp.abs(x)
    poly = x ** 4 / (-8.0 * a ** 3) + jnp.square(x) * 3.0 / 4.0 / a + 3.0 * a / 8.0
    smooth_abs = jnp.where(abs_x < a, poly, abs_x)
    return jnp.sum(jnp.sqrt(smooth_abs))


if __name__ == "__main__":
    mod = L12Smooth()

    # 1) NCHW-style prediction tensor (n % 128 == 0 -> zero-copy path).
    x = jax.random.normal(jax.random.PRNGKey(0), (2, 4, 16, 16), dtype=jnp.float32) * 0.2
    out = jax.block_until_ready(mod(x, a=0.05))
    ref = _reference(x, a=0.05)
    assert jnp.allclose(out, ref, rtol=1e-5, atol=1e-4), (out, ref)

    # 2) List path: small tensors fused per dtype; ragged size exercises the
    #    lane pad + exact correction and the odd-row remainder accumulate.
    x2 = jax.random.normal(jax.random.PRNGKey(1), (3, 7, 5), dtype=jnp.float32)
    out_list = jax.block_until_ready(mod([x, x2]))
    ref_list = _reference(x) + _reference(x2)
    assert jnp.allclose(out_list, ref_list, rtol=1e-5, atol=1e-4), (out_list, ref_list)

    # 3) Multi-tile grid with a masked partial last tile (forced small tiles).
    x3 = jax.random.normal(jax.random.PRNGKey(2), (3, 5, 41, 7), dtype=jnp.float32) * 0.3
    out3 = jax.block_until_ready(_l12_smooth_single(x3, 0.05, max_tile_rows=16))
    ref3 = _reference(x3)
    assert jnp.allclose(out3, ref3, rtol=1e-5, atol=1e-4), (out3, ref3)

    # 4) Two parallel slices + phantom tile + tail row-mask (forced small tiles).
    x5 = jax.random.normal(jax.random.PRNGKey(4), (135, 128), dtype=jnp.float32) * 0.5
    out5 = jax.block_until_ready(_l12_smooth_single(x5, 0.05, max_tile_rows=8))
    ref5 = _reference(x5)
    assert jnp.allclose(out5, ref5, rtol=1e-5, atol=1e-4), (out5, ref5)

    # 5) bf16 input streamed natively (kernel casts per tile).
    x4 = (jax.random.normal(jax.random.PRNGKey(3), (8, 128)) * 0.2).astype(jnp.bfloat16)
    out4 = jax.block_until_ready(mod(x4))
    ref4 = _reference(x4)
    assert jnp.allclose(out4, ref4, rtol=1e-5, atol=1e-4), (out4, ref4)

    print("KERNEL_OK")
</pallas_src>

<mosaic_0001>
module attributes {stable_mosaic.version = 11 : i64} {
  func.func @_l12_kernel(%arg0: i32, %arg1: i32, %arg2: memref<16x128xf32, #tpu.memory_space<vmem>>, %arg3: memref<8x128xf32, #tpu.memory_space<vmem>>, %arg4: memref<8x128xf32, #tpu.memory_space<vmem>>) attributes {dimension_semantics = [#tpu.dimension_semantics<parallel>, #tpu.dimension_semantics<arbitrary>], iteration_bounds = array<i64: 1, 1>, scalar_prefetch = 0 : i64, scratch_operands = 1 : i64, tpu.core_type = #tpu.core_type<tc>, window_params = [{transform_indices = @transform_0, window_bounds = array<i64: 16, 128>}, {transform_indices = @transform_1, window_bounds = array<i64: 8, 128>}]} {
    %c0_i32 = arith.constant 0 : i32
    %0 = arith.cmpi eq, %arg1, %c0_i32 : i32
    %1 = arith.extui %0 : i1 to i32
    %c0_i32_0 = arith.constant 0 : i32
    %2 = arith.cmpi ne, %1, %c0_i32_0 : i32
    scf.if %2 {
      %cst_12 = arith.constant 0.000000e+00 : f32
      %25 = vector.broadcast %cst_12 : f32 to vector<8x128xf32>
      %c0_13 = arith.constant 0 : index
      %c0_14 = arith.constant 0 : index
      %26 = vector.load %arg4[%c0_13, %c0_14] : memref<8x128xf32, #tpu.memory_space<vmem>>, vector<8x128xf32>
      tpu.vector_store %arg4[%c0_13, %c0_14], %25 {strides = array<i32>} : memref<8x128xf32, #tpu.memory_space<vmem>>, vector<8x128xf32>,
    } else {
    }
    %c0 = arith.constant 0 : index
    %c0_1 = arith.constant 0 : index
    %3 = vector.load %arg2[%c0, %c0_1] : memref<16x128xf32, #tpu.memory_space<vmem>>, vector<16x128xf32>
    %4 = math.absf %3 : vector<16x128xf32>
    %5 = arith.mulf %3, %3 : vector<16x128xf32>
    %cst = arith.constant -1.000000e+03 : f32
    %6 = vector.broadcast %cst : f32 to vector<16x128xf32>
    %7 = arith.mulf %5, %6 : vector<16x128xf32>
    %cst_2 = arith.constant 1.500000e+01 : f32
    %8 = vector.broadcast %cst_2 : f32 to vector<16x128xf32>
    %9 = arith.addf %7, %8 : vector<16x128xf32>
    %10 = arith.mulf %5, %9 : vector<16x128xf32>
    %cst_3 = arith.constant 1.875000e-02 : f32
    %11 = vector.broadcast %cst_3 : f32 to vector<16x128xf32>
    %12 = arith.addf %10, %11 : vector<16x128xf32>
    %cst_4 = arith.constant 5.000000e-02 : f32
    %13 = vector.broadcast %cst_4 : f32 to vector<16x128xf32>
    %14 = arith.cmpf olt, %4, %13 : vector<16x128xf32>
    %15 = arith.select %14, %12, %4 : vector<16x128xi1>, vector<16x128xf32>
    %16 = math.sqrt %15 : vector<16x128xf32>
    %c0_5 = arith.constant 0 : index
    %c0_6 = arith.constant 0 : index
    %17 = vector.load %arg4[%c0_5, %c0_6] : memref<8x128xf32, #tpu.memory_space<vmem>>, vector<8x128xf32>
    %18 = vector.shape_cast %16 : vector<16x128xf32> to vector<2x8x128xf32>
    %cst_7 = arith.constant dense<0.000000e+00> : vector<8x128xf32>
    %19 = vector.multi_reduction <add>, %18, %cst_7 [0] : vector<2x8x128xf32> to vector<8x128xf32>
    %20 = arith.addf %17, %19 : vector<8x128xf32>
    %c0_8 = arith.constant 0 : index
    %c0_9 = arith.constant 0 : index
    %21 = vector.load %arg4[%c0_8, %c0_9] : memref<8x128xf32, #tpu.memory_space<vmem>>, vector<8x128xf32>
    tpu.vector_store %arg4[%c0_8, %c0_9], %20 {strides = array<i32>} : memref<8x128xf32, #tpu.memory_space<vmem>>, vector<8x128xf32>,
    %c0_i32_10 = arith.constant 0 : i32
    %22 = arith.cmpi eq, %arg1, %c0_i32_10 : i32
    %23 = arith.extui %22 : i1 to i32
    %c0_i32_11 = arith.constant 0 : i32
    %24 = arith.cmpi ne, %23, %c0_i32_11 : i32
    scf.if %24 {
      %c0_12 = arith.constant 0 : index
      %c0_13 = arith.constant 0 : index
      %25 = vector.load %arg4[%c0_12, %c0_13] : memref<8x128xf32, #tpu.memory_space<vmem>>, vector<8x128xf32>
      %c0_14 = arith.constant 0 : index
      %c0_15 = arith.constant 0 : index
      %26 = vector.load %arg3[%c0_14, %c0_15] : memref<8x128xf32, #tpu.memory_space<vmem>>, vector<8x128xf32>
      tpu.vector_store %arg3[%c0_14, %c0_15], %25 {strides = array<i32>} : memref<8x128xf32, #tpu.memory_space<vmem>>, vector<8x128xf32>,
    } else {
    }
    return
  }
  func.func @transform_0(%arg0: i32, %arg1: i32) -> (i32, i32) {
    %c1_i32 = arith.constant 1 : i32
    %0 = arith.muli %arg0, %c1_i32 : i32
    %1 = arith.addi %0, %arg1 : i32
    %c0_i32 = arith.constant 0 : i32
    %c0_i32_0 = arith.constant 0 : i32
    return %1, %c0_i32 : i32, i32
  }
  func.func @transform_1(%arg0: i32, %arg1: i32) -> (i32, i32) {
    %c0_i32 = arith.constant 0 : i32
    %c0_i32_0 = arith.constant 0 : i32
    return %arg0, %c0_i32 : i32, i32
  }
}

</mosaic_0001>

<bundles_post_ra>
// kernel: tpu_custom_call.1
= control target key start
LH: loop header
LB: loop body
LE: loop exit
PB: predicated region body
PF: predicated region fallthrough
CT: control target
= control target key end

     0   :  { %6 = vsyncpa [#allocation4], 0  ;;  %s184_s0 = inlined_call_operand.hbm [shape: f32[16,128], index: 0, kind: input, shape index: {}]   ;;  %s185_s1 = inlined_call_operand.hbm [shape: f32[8,128], index: 1, kind: output, shape index: {}]  }
   0x1   :  { %7 = vsyncpa [#allocation5], 0  ;;  %s146_s6 = smov [#allocation3]   ;;  %s98_s10 = scalar_lea.hbm %s184_s0, 256 }
   0x2   :  { %s17_s7 = sshll.u32 %s146_s6, 4  ;;  %p99_p0 = scmp.ne.s32.totalorder %s184_s0, %s98_s10  ;;  %s18_s7 = int_to_ptr.vmem [resolvable:$true] %s17_s7 }
   0x3   :  { %p102_p1 = scmp.lt.u32.totalorder %s98_s10, %s184_s0 }
   0x5   :  { %p104_p2 = pnand %p102_p1, %p99_p0 }
   0x7   :  { %107 = shalt.err (!%p104_p2)
}
   0x8   :  { %s108_s15 = scalar_lea.vmem %s18_s7, 256  ;;  %p113_p4 = scmp.lt.s32.totalorder %s18_s7, %s18_s7 }
   0x9   :  { %p109_p3 = scmp.ne.s32.totalorder %s18_s7, %s108_s15  ;;  %p114_p5 = scmp.lt.s32.totalorder %s108_s15, %s108_s15 }
   0xb   :  { %p115_p6 = por %p114_p5, %p113_p4 }
   0xd   :  { %p116_p7 = pnand %p115_p6, %p109_p3 }
   0xf   :  { %119 = shalt.err (!%p116_p7)
}
  0x10   :  { %s147_s16 = smov 128   ;;  %s148_s17 = smov 8  }
  0x11   :  { %23 = dma.hbm_to_vmem [thread:$0]  %s184_s0, 256, %s18_s7, [#allocation4], %s147_s16, %s147_s16, %s148_s17  }
  0x12   :  { %142 = dma.done.wait [#allocation4], 256  }
  0x13   :  { %143 = vsyncadd [#allocation4], 4294967040  ;;  %v34_v0 = vld [vmem:[#allocation3] sm:$0xff]  ;;  %v35_v1 = vld [vmem:[#allocation3 + $0x8] sm:$0xff]  ;;  %s149_s0 = smov [#allocation6]  }
  0x14   :  { %v38_v2 = vmul.f32 %v34_v0, %v34_v0  ;;  %v39_v3 = vmul.f32 %v35_v1, %v35_v1  ;;  %v36_v6 = vand.u32 2147483647, %v34_v0  ;;  %v37_v7 = vand.u32 2147483647, %v35_v1  ;;  %s81_s20 = sshll.u32 %s149_s0, 4  ;;  %s82_s20 = int_to_ptr.vmem [resolvable:$true] %s81_s20 }
  0x15   :  { %s120_s21 = scalar_lea.vmem %s82_s20, 128  ;;  %p125_p9 = scmp.lt.s32.totalorder %s82_s20, %s82_s20 }
  0x16   :  { %v40_v4 = vmul.f32 -1000.0, %v38_v2  ;;  %v41_v5 = vmul.f32 -1000.0, %v39_v3  ;;  %vm48_vm0 = vcmp.lt.f32.partialorder %v36_v6, 0.05  ;;  %vm49_vm1 = vcmp.lt.f32.partialorder %v37_v7, 0.05  ;;  %p121_p8 = scmp.ne.s32.totalorder %s82_s20, %s120_s21  ;;  %p126_p10 = scmp.lt.s32.totalorder %s120_s21, %s120_s21 }
  0x18   :  { %v42_v8 = vadd.f32 15.0, %v40_v4  ;;  %v43_v9 = vadd.f32 15.0, %v41_v5  ;;  %p127_p11 = por %p126_p10, %p125_p9 }
  0x1a   :  { %v44_v10 = vmul.f32 %v42_v8, %v38_v2  ;;  %v45_v11 = vmul.f32 %v43_v9, %v39_v3  ;;  %p128_p12 = pnand %p127_p11, %p121_p8 }
  0x1c   :  { %v46_v12 = vadd.f32 0.01875, %v44_v10  ;;  %v47_v13 = vadd.f32 0.01875, %v45_v11 }
  0x1e   :  { %v50_v14 = vsel %vm48_vm0, %v46_v12, %v36_v6  ;;  %v51_v15 = vsel %vm49_vm1, %v47_v13, %v37_v7 }
  0x1f   :  { %94 = vrsqrt.f32 %v50_v14  ;;  %vm54_vm2 = vcmp.eq.f32.partialorder %v50_v14, inf  ;;  %v57_v17 = vand.u32 2147483648, %v50_v14  ;;  %vm56_vm3 = vcmp.eq.f32.partialorder %v50_v14, 0.0 }
  0x20   :  { %96 = vrsqrt.f32 %v51_v15  ;;  %vm61_vm4 = vcmp.eq.f32.partialorder %v51_v15, inf  ;;  %v64_v20 = vand.u32 2147483648, %v51_v15  ;;  %vm63_vm5 = vcmp.eq.f32.partialorder %v51_v15, 0.0 }
  0x29   :  { %v95_v16 = vpop.eup %94 }
  0x2a   :  { %v97_v18 = vpop.eup %96  ;;  %v53_v19 = vmul.f32 %v95_v16, %v50_v14 }
  0x2b   :  { %v60_v21 = vmul.f32 %v97_v18, %v51_v15 }
  0x2c   :  { %v55_v22 = vsel %vm54_vm2, %v50_v14, %v53_v19 }
  0x2d   :  { %v58_v23 = vsel %vm56_vm3, %v57_v17, %v55_v22  ;;  %v62_v24 = vsel %vm61_vm4, %v51_v15, %v60_v21 }
  0x2e   :  { %v65_v25 = vsel %vm63_vm5, %v64_v20, %v62_v24 }
  0x2f   :  { %v67_v26 = vadd.f32 %v65_v25, %v58_v23 }
  0x31   :  { %74 = vst [vmem:[#allocation6] sm:$0xff] %v67_v26 }
  0x32   :  { %131 = shalt.err (!%p128_p12)
}
  0x33   :  { %s132_s24 = scalar_lea.hbm %s185_s1, 128 }
  0x34   :  { %p133_p13 = scmp.ne.s32.totalorder %s185_s1, %s132_s24  ;;  %p136_p0 = scmp.lt.u32.totalorder %s132_s24, %s185_s1 }
  0x36   :  { %p138_p1 = pnand %p136_p0, %p133_p13 }
  0x38   :  { %141 = shalt.err (!%p138_p1)
}
  0x39   :  { %84 = dma.vmem_to_hbm [thread:$0]  %s82_s20, 128, %s185_s1, [#allocation5]  }
  0x3a   :  { %144 = dma.done.wait [#allocation5], 128  }
  0x3b   :  { %145 = vsyncadd [#allocation5], 4294967168 }
  0x3c   :  { %88 = vsyncpa [#allocation4], 1 }
  0x3d   :  { %89 = vsyncpa [#allocation5], 1 }

</bundles_post_ra>
